<compile_context>
chip_gen: v7x
topology: tpu7x:2x2x1
jax: 0.10.0
libtpu: 0.0.40
codegen_flags: <defaults>
</compile_context>

<pallas_src>
import jax
import jax.numpy as jnp
from jax import lax
from jax.experimental import pallas as pl
from jax.experimental.pallas import tpu as pltpu


_MAX_TILE_NODES = 4096               # nodes per grid step (mem/overhead bound)
_VMEM_LIMIT_BYTES = 32 * 1024 * 1024  # safe on v5e/v6e (128 MiB) and v7x (64 MiB)


def _round_up(x, m):
    return ((x + m - 1) // m) * m


# --------------------------------- kernel -----------------------------------


def _node_embed_kernel(idx_ref, flt_ref, w_oh_ref, w_f_ref, out_ref):
    """Fused node embedding for one tile of P-packed nodes.

    idx_ref : [T, 3*P] int32  -- absolute one-hot row indices, already shifted
                                 into each node's block-diagonal segment.
    flt_ref : [T, P*F] f32    -- shape/bias values + constant-1 bias columns.
    w_oh_ref: [P*K, P*E] f32  -- block-diag replicated embedding tables.
    w_f_ref : [P*F, P*E] f32  -- block-diag replicated Linear weights/biases.
    out_ref : [T, P*E] f32    -- P node embeddings per row (lane-dense store).
    """
    t = idx_ref.shape[0]
    n_slots = idx_ref.shape[1]
    k_cols = w_oh_ref.shape[0]
    iota = lax.broadcasted_iota(jnp.int32, (t, k_cols), 1)
    hot = iota == idx_ref[:, 0:1]
    for s in range(1, n_slots):          # statically unrolled; no lane concat
        hot = jnp.logical_or(hot, iota == idx_ref[:, s:s + 1])
    one_hot = hot.astype(jnp.float32)
    out_ref[...] = (
        jnp.dot(one_hot, w_oh_ref[...], preferred_element_type=jnp.float32)
        + jnp.dot(flt_ref[...], w_f_ref[...], preferred_element_type=jnp.float32))


# ---------------------------- fused weight build -----------------------------


def _fused_weights(params, cfg):
    """Fold every Embedding table and Linear layer (weights AND biases) into a
    unified one-hot weight matrix plus a float-feature weight matrix whose
    output columns already have the final concatenated layout."""
    L = cfg["n_unique_labels"]
    S = cfg["n_shape_vals"]
    nk = cfg["n_unique_kernels"]
    E = cfg["out_embed_size"]
    sh = cfg["shape_embed_size"]
    ke = cfg["kernel_embed_size"] // 2
    r_out = cfg["regular_out"]
    w_out = cfg["weighted_out"]

    k_u = 2 * L + 2 * nk + 1             # +1: all-zero "dead" row for padding
    f_half = S + 2
    F = 2 * f_half

    w_oh = jnp.zeros((k_u, E), jnp.float32)
    w_oh = w_oh.at[0:L, 0:w_out].set(params["weighted_tbl"])
    w_oh = w_oh.at[L:2 * L, 0:r_out].set(params["regular_tbl"])
    w_oh = w_oh.at[2 * L:2 * L + nk,
                   w_out + sh:w_out + sh + ke].set(params["kernel_tbl"])
    w_oh = w_oh.at[2 * L + nk:2 * L + 2 * nk,
                   w_out + sh + ke:w_out + sh + 2 * ke].set(params["kernel_tbl"])
    # row k_u-1 ("dead") stays zero -> padded nodes emit exact zeros.

    w_f = jnp.zeros((F, E), jnp.float32)
    # weighted nodes: shape values, bias values, constant-1 column for biases
    w_f = w_f.at[0:S, w_out:w_out + sh].set(params["shape_w"])
    w_f = w_f.at[S:S + 2, w_out + sh + 2 * ke:E].set(params["bias_w"])
    w_f = w_f.at[F - 2, w_out:w_out + sh].set(params["shape_b"][0])
    w_f = w_f.at[F - 2, w_out + sh + 2 * ke:E].set(params["bias_b"][0])
    # regular nodes: shape values, constant-1 column for the shape-layer bias
    w_f = w_f.at[f_half:f_half + S, r_out:E].set(params["shape_w"])
    w_f = w_f.at[F - 1, r_out:E].set(params["shape_b"][0])
    return w_oh, w_f, k_u, F


def _block_diag_replicate(w, p):
    if p == 1:
        return w
    k, e = w.shape
    out = jnp.zeros((p * k, p * e), w.dtype)
    for q in range(p):
        out = out.at[q * k:(q + 1) * k, q * e:(q + 1) * e].set(w)
    return out


# ------------------------------- input packing -------------------------------


def _pack_weighted(cfg, inds, shapes, kernels, bias):
    L = cfg["n_unique_labels"]
    nk = cfg["n_unique_kernels"]
    S = cfg["n_shape_vals"]
    B, N = inds.shape
    lab = inds.astype(jnp.int32)
    k0 = kernels[..., 0].astype(jnp.int32) + 2 * L
    k1 = kernels[..., 1].astype(jnp.int32) + (2 * L + nk)
    idx = jnp.stack([lab, k0, k1], axis=-1)                        # (B, N, 3)
    one = jnp.ones((B, N, 1), jnp.float32)
    zero1 = jnp.zeros((B, N, 1), jnp.float32)
    flt = jnp.concatenate(                                         # (B, N, F)
        [shapes.astype(jnp.float32), bias.astype(jnp.float32),
         jnp.zeros((B, N, S), jnp.float32), one, zero1], axis=-1)
    return idx, flt


def _pack_regular(cfg, inds, shapes):
    L = cfg["n_unique_labels"]
    nk = cfg["n_unique_kernels"]
    S = cfg["n_shape_vals"]
    dead = 2 * L + 2 * nk
    B, N = inds.shape
    lab = inds.astype(jnp.int32) + L
    d = jnp.full((B, N), dead, jnp.int32)
    idx = jnp.stack([lab, d, d], axis=-1)                          # (B, N, 3)
    one = jnp.ones((B, N, 1), jnp.float32)
    zero1 = jnp.zeros((B, N, 1), jnp.float32)
    flt = jnp.concatenate(                                         # (B, N, F)
        [jnp.zeros((B, N, S + 2), jnp.float32), shapes.astype(jnp.float32),
         zero1, one], axis=-1)
    return idx, flt


# ---------------------------------- params -----------------------------------


def init_cg_node_embedding_params(key, *, n_unique_labels, out_embed_size,
                                  shape_embed_size, kernel_embed_size,
                                  bias_embed_size=2, n_unique_kernels=8,
                                  n_shape_vals=6):
    assert kernel_embed_size % 2 == 0
    reg_out = out_embed_size - shape_embed_size
    w_out = out_embed_size - shape_embed_size - kernel_embed_size - bias_embed_size
    ks = jax.random.split(key, 7)
    params = {
        "regular_tbl": jax.random.normal(ks[0], (n_unique_labels, reg_out), jnp.float32),
        "weighted_tbl": jax.random.normal(ks[1], (n_unique_labels, w_out), jnp.float32),
        "kernel_tbl": jax.random.normal(ks[2], (n_unique_kernels, kernel_embed_size // 2),
                                        jnp.float32),
        "shape_w": 0.1 * jax.random.normal(ks[3], (n_shape_vals, shape_embed_size), jnp.float32),
        "shape_b": 0.1 * jax.random.normal(ks[4], (1, shape_embed_size), jnp.float32),
        "bias_w": 0.1 * jax.random.normal(ks[5], (2, bias_embed_size), jnp.float32),
        "bias_b": 0.1 * jax.random.normal(ks[6], (1, bias_embed_size), jnp.float32),
    }
    cfg = dict(n_unique_labels=n_unique_labels, out_embed_size=out_embed_size,
               shape_embed_size=shape_embed_size, kernel_embed_size=kernel_embed_size,
               bias_embed_size=bias_embed_size, n_unique_kernels=n_unique_kernels,
               n_shape_vals=n_shape_vals, regular_out=reg_out, weighted_out=w_out)
    return params, cfg


# --------------------------------- forward ------------------------------------


def cg_node_embedding_forward(params, cfg,
                              regular_node_inds, regular_node_shapes,
                              weighted_node_inds, weighted_node_shapes,
                              weighted_node_kernels, weighted_node_bias):
    have_r = regular_node_inds is not None
    have_w = weighted_node_inds is not None
    if not have_r and not have_w:
        raise ValueError("Input to CGNodeEmbedding cannot both be None")

    E = cfg["out_embed_size"]
    w_oh, w_f, k_u, F = _fused_weights(params, cfg)
    dead = k_u - 1

    # NOTE: out-of-range label/kernel indices silently produce all-zero rows
    # (PyTorch nn.Embedding would raise); validate indices upstream if needed.
    idx_parts, flt_parts = [], []
    if have_w:
        iw, fw = _pack_weighted(cfg, weighted_node_inds, weighted_node_shapes,
                                weighted_node_kernels, weighted_node_bias)
        idx_parts.append(iw)
        flt_parts.append(fw)
    if have_r:
        ir, fr = _pack_regular(cfg, regular_node_inds, regular_node_shapes)
        idx_parts.append(ir)
        flt_parts.append(fr)
    idx = idx_parts[0] if len(idx_parts) == 1 else jnp.concatenate(idx_parts, axis=1)
    flt = flt_parts[0] if len(flt_parts) == 1 else jnp.concatenate(flt_parts, axis=1)
    B, ntot = idx.shape[0], idx.shape[1]

    # Lane-dense packing: P nodes per matmul/output row -> 128-wide stores.
    P = 128 // E if (0 < E < 128 and 128 % E == 0) else 1
    node_align = 8 * P

    # Tile as big as reasonable (mem/overhead bound); pad node axis to tile.
    cap = max((_MAX_TILE_NODES // node_align) * node_align, node_align)
    n_pad = _round_up(ntot, node_align)
    if n_pad <= cap:
        tn = n_pad
    else:
        tn = cap
        n_pad = _round_up(ntot, tn)
    num_tiles = n_pad // tn
    # v7x megacore: keep >= 2 parallel blocks when possible.
    if B * num_tiles < 2 and tn % (2 * node_align) == 0:
        tn //= 2
        num_tiles = n_pad // tn

    if n_pad != ntot:
        pad = n_pad - ntot
        idx = jnp.concatenate([idx, jnp.full((B, pad, 3), dead, jnp.int32)], axis=1)
        flt = jnp.concatenate([flt, jnp.zeros((B, pad, F), jnp.float32)], axis=1)

    # P-pack: node (r*P + q) lands in block-diagonal segment q of the weights.
    n_rows = n_pad // P
    idx_p = (idx.reshape(B, n_rows, P, 3)
             + (jnp.arange(P, dtype=jnp.int32) * k_u)[None, None, :, None])
    idx_p = idx_p.reshape(B, n_rows, 3 * P)
    flt_p = flt.reshape(B, n_rows, P * F)
    w_oh_p = _block_diag_replicate(w_oh, P)
    w_f_p = _block_diag_replicate(w_f, P)

    t_rows = tn // P
    sq = pl.Squeezed()
    tile_map = lambda b, j: (b, j, 0)
    full_map = lambda b, j: (0, 0)

    flops = 2 * B * n_pad * (k_u + F) * E
    bytes_accessed = 4 * (idx_p.size + flt_p.size + w_oh_p.size + w_f_p.size
                          + B * n_pad * E)

    out = pl.pallas_call(
        _node_embed_kernel,
        out_shape=jax.ShapeDtypeStruct((B, n_rows, P * E), jnp.float32),
        grid_spec=pltpu.PrefetchScalarGridSpec(
            num_scalar_prefetch=0,
            grid=(B, num_tiles),
            in_specs=[
                pl.BlockSpec((sq, t_rows, 3 * P), tile_map),
                pl.BlockSpec((sq, t_rows, P * F), tile_map),
                pl.BlockSpec(w_oh_p.shape, full_map),
                pl.BlockSpec(w_f_p.shape, full_map),
            ],
            out_specs=pl.BlockSpec((sq, t_rows, P * E), tile_map)),
        compiler_params=pltpu.CompilerParams(
            dimension_semantics=("parallel", "parallel"),
            vmem_limit_bytes=_VMEM_LIMIT_BYTES),
        cost_estimate=pl.CostEstimate(flops=flops, transcendentals=0,
                                      bytes_accessed=bytes_accessed),
    )(idx_p, flt_p, w_oh_p, w_f_p)

    out = out.reshape(B, n_pad, E)          # free contiguous reshape
    if n_pad != ntot:
        out = out[:, :ntot, :]              # drop padded (all-zero) rows
    return out


# ----------------------------- reference (pure JAX) ---------------------------


def _reference_forward(params, cfg,
                       r_inds, r_shapes, w_inds, w_shapes, w_kernels, w_bias):
    def linear(x, w, b):
        return x @ w + b[0]

    reg = jnp.take(params["regular_tbl"], r_inds, axis=0)
    reg_shape = linear(r_shapes, params["shape_w"], params["shape_b"])
    regular = jnp.concatenate([reg, reg_shape], axis=-1)

    wemb = jnp.take(params["weighted_tbl"], w_inds, axis=0)
    kemb = jnp.take(params["kernel_tbl"], w_kernels, axis=0)
    kemb = kemb.reshape(kemb.shape[0], kemb.shape[1], -1)
    wshape = linear(w_shapes, params["shape_w"], params["shape_b"])
    wbias = linear(w_bias, params["bias_w"], params["bias_b"])
    weighted = jnp.concatenate([wemb, wshape, kemb, wbias], axis=-1)
    return jnp.concatenate([weighted, regular], axis=1)


# ------------------------------------ main ------------------------------------


if __name__ == "__main__":
    key = jax.random.PRNGKey(0)
    kp, k1, k2, k3, k4, k5, k6 = jax.random.split(key, 7)

    n_unique_labels = 16
    out_embed_size = 32
    shape_embed_size = 8
    kernel_embed_size = 4
    bias_embed_size = 2
    n_unique_kernels = 8
    n_shape_vals = 6

    params, cfg = init_cg_node_embedding_params(
        kp, n_unique_labels=n_unique_labels, out_embed_size=out_embed_size,
        shape_embed_size=shape_embed_size, kernel_embed_size=kernel_embed_size,
        bias_embed_size=bias_embed_size, n_unique_kernels=n_unique_kernels,
        n_shape_vals=n_shape_vals)

    B, Nr, Nw = 2, 7, 9   # odd counts: exercises node-axis padding + slicing
    regular_node_inds = jax.random.randint(k1, (B, Nr), 0, n_unique_labels, jnp.int32)
    regular_node_shapes = jax.random.uniform(k2, (B, Nr, n_shape_vals), jnp.float32)
    weighted_node_inds = jax.random.randint(k3, (B, Nw), 0, n_unique_labels, jnp.int32)
    weighted_node_shapes = jax.random.uniform(k4, (B, Nw, n_shape_vals), jnp.float32)
    weighted_node_kernels = jax.random.randint(k5, (B, Nw, 2), 0, n_unique_kernels, jnp.int32)
    weighted_node_bias = jax.random.uniform(k6, (B, Nw, 2), jnp.float32)

    out = cg_node_embedding_forward(
        params, cfg,
        regular_node_inds, regular_node_shapes,
        weighted_node_inds, weighted_node_shapes,
        weighted_node_kernels, weighted_node_bias)
    out = jax.block_until_ready(out)

    ref = _reference_forward(params, cfg,
                             regular_node_inds, regular_node_shapes,
                             weighted_node_inds, weighted_node_shapes,
                             weighted_node_kernels, weighted_node_bias)

    assert out.shape == (B, Nw + Nr, out_embed_size), out.shape
    assert jnp.allclose(out, ref, atol=1e-5, rtol=1e-5), "mismatch vs. pure-JAX reference"
    print("KERNEL_OK")
</pallas_src>

<mosaic_0001>
module attributes {stable_mosaic.version = 11 : i64} {
  func.func @_node_embed_kernel(%arg0: i32, %arg1: i32, %arg2: memref<1x8x12xi32, #tpu.memory_space<vmem>>, %arg3: memref<1x8x64xf32, #tpu.memory_space<vmem>>, %arg4: memref<196x128xf32, #tpu.memory_space<vmem>>, %arg5: memref<64x128xf32, #tpu.memory_space<vmem>>, %arg6: memref<1x8x128xf32, #tpu.memory_space<vmem>>) attributes {dimension_semantics = [#tpu.dimension_semantics<parallel>, #tpu.dimension_semantics<parallel>], iteration_bounds = array<i64: 2, 1>, scalar_prefetch = 0 : i64, scratch_operands = 0 : i64, tpu.core_type = #tpu.core_type<tc>, window_params = [{transform_indices = @transform_0, window_bounds = array<i64: 1, 8, 12>}, {transform_indices = @transform_1, window_bounds = array<i64: 1, 8, 64>}, {pipeline_mode = #tpu.pipeline_mode<synchronous>, transform_indices = @transform_2, window_bounds = array<i64: 196, 128>}, {pipeline_mode = #tpu.pipeline_mode<synchronous>, transform_indices = @transform_3, window_bounds = array<i64: 64, 128>}, {transform_indices = @transform_4, window_bounds = array<i64: 1, 8, 128>}]} {
    %0 = tpu.iota {dimensions = array<i32: 1>} : vector<8x196xi32>
    %c0 = arith.constant 0 : index
    %c0_0 = arith.constant 0 : index
    %c0_1 = arith.constant 0 : index
    %1 = vector.load %arg2[%c0, %c0_0, %c0_1] : memref<1x8x12xi32, #tpu.memory_space<vmem>>, vector<1x8x1xi32>
    %2 = vector.shape_cast %1 : vector<1x8x1xi32> to vector<8x1xi32>
    %3 = vector.broadcast %2 : vector<8x1xi32> to vector<8x196xi32>
    %4 = arith.cmpi eq, %0, %3 : vector<8x196xi32>
    %c0_2 = arith.constant 0 : index
    %c0_3 = arith.constant 0 : index
    %c1 = arith.constant 1 : index
    %5 = vector.load %arg2[%c0_2, %c0_3, %c1] : memref<1x8x12xi32, #tpu.memory_space<vmem>>, vector<1x8x1xi32>
    %6 = vector.shape_cast %5 : vector<1x8x1xi32> to vector<8x1xi32>
    %7 = vector.broadcast %6 : vector<8x1xi32> to vector<8x196xi32>
    %8 = arith.cmpi eq, %0, %7 : vector<8x196xi32>
    %9 = arith.ori %4, %8 : vector<8x196xi1>
    %c0_4 = arith.constant 0 : index
    %c0_5 = arith.constant 0 : index
    %c2 = arith.constant 2 : index
    %10 = vector.load %arg2[%c0_4, %c0_5, %c2] : memref<1x8x12xi32, #tpu.memory_space<vmem>>, vector<1x8x1xi32>
    %11 = vector.shape_cast %10 : vector<1x8x1xi32> to vector<8x1xi32>
    %12 = vector.broadcast %11 : vector<8x1xi32> to vector<8x196xi32>
    %13 = arith.cmpi eq, %0, %12 : vector<8x196xi32>
    %14 = arith.ori %9, %13 : vector<8x196xi1>
    %c0_6 = arith.constant 0 : index
    %c0_7 = arith.constant 0 : index
    %c3 = arith.constant 3 : index
    %15 = vector.load %arg2[%c0_6, %c0_7, %c3] : memref<1x8x12xi32, #tpu.memory_space<vmem>>, vector<1x8x1xi32>
    %16 = vector.shape_cast %15 : vector<1x8x1xi32> to vector<8x1xi32>
    %17 = vector.broadcast %16 : vector<8x1xi32> to vector<8x196xi32>
    %18 = arith.cmpi eq, %0, %17 : vector<8x196xi32>
    %19 = arith.ori %14, %18 : vector<8x196xi1>
    %c0_8 = arith.constant 0 : index
    %c0_9 = arith.constant 0 : index
    %c4 = arith.constant 4 : index
    %20 = vector.load %arg2[%c0_8, %c0_9, %c4] : memref<1x8x12xi32, #tpu.memory_space<vmem>>, vector<1x8x1xi32>
    %21 = vector.shape_cast %20 : vector<1x8x1xi32> to vector<8x1xi32>
    %22 = vector.broadcast %21 : vector<8x1xi32> to vector<8x196xi32>
    %23 = arith.cmpi eq, %0, %22 : vector<8x196xi32>
    %24 = arith.ori %19, %23 : vector<8x196xi1>
    %c0_10 = arith.constant 0 : index
    %c0_11 = arith.constant 0 : index
    %c5 = arith.constant 5 : index
    %25 = vector.load %arg2[%c0_10, %c0_11, %c5] : memref<1x8x12xi32, #tpu.memory_space<vmem>>, vector<1x8x1xi32>
    %26 = vector.shape_cast %25 : vector<1x8x1xi32> to vector<8x1xi32>
    %27 = vector.broadcast %26 : vector<8x1xi32> to vector<8x196xi32>
    %28 = arith.cmpi eq, %0, %27 : vector<8x196xi32>
    %29 = arith.ori %24, %28 : vector<8x196xi1>
    %c0_12 = arith.constant 0 : index
    %c0_13 = arith.constant 0 : index
    %c6 = arith.constant 6 : index
    %30 = vector.load %arg2[%c0_12, %c0_13, %c6] : memref<1x8x12xi32, #tpu.memory_space<vmem>>, vector<1x8x1xi32>
    %31 = vector.shape_cast %30 : vector<1x8x1xi32> to vector<8x1xi32>
    %32 = vector.broadcast %31 : vector<8x1xi32> to vector<8x196xi32>
    %33 = arith.cmpi eq, %0, %32 : vector<8x196xi32>
    %34 = arith.ori %29, %33 : vector<8x196xi1>
    %c0_14 = arith.constant 0 : index
    %c0_15 = arith.constant 0 : index
    %c7 = arith.constant 7 : index
    %35 = vector.load %arg2[%c0_14, %c0_15, %c7] : memref<1x8x12xi32, #tpu.memory_space<vmem>>, vector<1x8x1xi32>
    %36 = vector.shape_cast %35 : vector<1x8x1xi32> to vector<8x1xi32>
    %37 = vector.broadcast %36 : vector<8x1xi32> to vector<8x196xi32>
    %38 = arith.cmpi eq, %0, %37 : vector<8x196xi32>
    %39 = arith.ori %34, %38 : vector<8x196xi1>
    %c0_16 = arith.constant 0 : index
    %c0_17 = arith.constant 0 : index
    %c8 = arith.constant 8 : index
    %40 = vector.load %arg2[%c0_16, %c0_17, %c8] : memref<1x8x12xi32, #tpu.memory_space<vmem>>, vector<1x8x1xi32>
    %41 = vector.shape_cast %40 : vector<1x8x1xi32> to vector<8x1xi32>
    %42 = vector.broadcast %41 : vector<8x1xi32> to vector<8x196xi32>
    %43 = arith.cmpi eq, %0, %42 : vector<8x196xi32>
    %44 = arith.ori %39, %43 : vector<8x196xi1>
    %c0_18 = arith.constant 0 : index
    %c0_19 = arith.constant 0 : index
    %c9 = arith.constant 9 : index
    %45 = vector.load %arg2[%c0_18, %c0_19, %c9] : memref<1x8x12xi32, #tpu.memory_space<vmem>>, vector<1x8x1xi32>
    %46 = vector.shape_cast %45 : vector<1x8x1xi32> to vector<8x1xi32>
    %47 = vector.broadcast %46 : vector<8x1xi32> to vector<8x196xi32>
    %48 = arith.cmpi eq, %0, %47 : vector<8x196xi32>
    %49 = arith.ori %44, %48 : vector<8x196xi1>
    %c0_20 = arith.constant 0 : index
    %c0_21 = arith.constant 0 : index
    %c10 = arith.constant 10 : index
    %50 = vector.load %arg2[%c0_20, %c0_21, %c10] : memref<1x8x12xi32, #tpu.memory_space<vmem>>, vector<1x8x1xi32>
    %51 = vector.shape_cast %50 : vector<1x8x1xi32> to vector<8x1xi32>
    %52 = vector.broadcast %51 : vector<8x1xi32> to vector<8x196xi32>
    %53 = arith.cmpi eq, %0, %52 : vector<8x196xi32>
    %54 = arith.ori %49, %53 : vector<8x196xi1>
    %c0_22 = arith.constant 0 : index
    %c0_23 = arith.constant 0 : index
    %c11 = arith.constant 11 : index
    %55 = vector.load %arg2[%c0_22, %c0_23, %c11] : memref<1x8x12xi32, #tpu.memory_space<vmem>>, vector<1x8x1xi32>
    %56 = vector.shape_cast %55 : vector<1x8x1xi32> to vector<8x1xi32>
    %57 = vector.broadcast %56 : vector<8x1xi32> to vector<8x196xi32>
    %58 = arith.cmpi eq, %0, %57 : vector<8x196xi32>
    %59 = arith.ori %54, %58 : vector<8x196xi1>
    %60 = arith.extui %59 : vector<8x196xi1> to vector<8x196xi32>
    %61 = arith.sitofp %60 : vector<8x196xi32> to vector<8x196xf32>
    %c0_24 = arith.constant 0 : index
    %c0_25 = arith.constant 0 : index
    %62 = vector.load %arg4[%c0_24, %c0_25] : memref<196x128xf32, #tpu.memory_space<vmem>>, vector<196x128xf32>
    %cst = arith.constant dense<0.000000e+00> : vector<8x128xf32>
    %63 = tpu.matmul %61, %62, %cst {dimension_numbers = #tpu.dot_dimension_numbers<[1], [0], [0], [1], [0, 0, 1, 1], [], []>} : vector<8x196xf32>, vector<196x128xf32>, vector<8x128xf32> -> vector<8x128xf32>
    %c0_26 = arith.constant 0 : index
    %c0_27 = arith.constant 0 : index
    %c0_28 = arith.constant 0 : index
    %64 = vector.load %arg3[%c0_26, %c0_27, %c0_28] : memref<1x8x64xf32, #tpu.memory_space<vmem>>, vector<1x8x64xf32>
    %65 = vector.shape_cast %64 : vector<1x8x64xf32> to vector<8x64xf32>
    %c0_29 = arith.constant 0 : index
    %c0_30 = arith.constant 0 : index
    %66 = vector.load %arg5[%c0_29, %c0_30] : memref<64x128xf32, #tpu.memory_space<vmem>>, vector<64x128xf32>
    %cst_31 = arith.constant dense<0.000000e+00> : vector<8x128xf32>
    %67 = tpu.matmul %65, %66, %cst_31 {dimension_numbers = #tpu.dot_dimension_numbers<[1], [0], [0], [1], [0, 0, 1, 1], [], []>} : vector<8x64xf32>, vector<64x128xf32>, vector<8x128xf32> -> vector<8x128xf32>
    %68 = arith.addf %63, %67 : vector<8x128xf32>
    %c0_32 = arith.constant 0 : index
    %c0_33 = arith.constant 0 : index
    %c0_34 = arith.constant 0 : index
    %69 = vector.load %arg6[%c0_32, %c0_33, %c0_34] : memref<1x8x128xf32, #tpu.memory_space<vmem>>, vector<1x8x128xf32>
    %70 = vector.shape_cast %69 : vector<1x8x128xf32> to vector<8x128xf32>
    %71 = vector.shape_cast %68 : vector<8x128xf32> to vector<1x8x128xf32>
    tpu.vector_store %arg6[%c0_32, %c0_33, %c0_34], %71 {strides = array<i32>} : memref<1x8x128xf32, #tpu.memory_space<vmem>>, vector<1x8x128xf32>,
    return
  }
  func.func @transform_0(%arg0: i32, %arg1: i32) -> (i32, i32, i32) {
    %c0_i32 = arith.constant 0 : i32
    %c0_i32_0 = arith.constant 0 : i32
    return %arg0, %arg1, %c0_i32 : i32, i32, i32
  }
  func.func @transform_1(%arg0: i32, %arg1: i32) -> (i32, i32, i32) {
    %c0_i32 = arith.constant 0 : i32
    %c0_i32_0 = arith.constant 0 : i32
    return %arg0, %arg1, %c0_i32 : i32, i32, i32
  }
  func.func @transform_2(%arg0: i32, %arg1: i32) -> (i32, i32) {
    %c0_i32 = arith.constant 0 : i32
    %c0_i32_0 = arith.constant 0 : i32
    %c0_i32_1 = arith.constant 0 : i32
    return %c0_i32, %c0_i32_0 : i32, i32
  }
  func.func @transform_3(%arg0: i32, %arg1: i32) -> (i32, i32) {
    %c0_i32 = arith.constant 0 : i32
    %c0_i32_0 = arith.constant 0 : i32
    %c0_i32_1 = arith.constant 0 : i32
    return %c0_i32, %c0_i32_0 : i32, i32
  }
  func.func @transform_4(%arg0: i32, %arg1: i32) -> (i32, i32, i32) {
    %c0_i32 = arith.constant 0 : i32
    %c0_i32_0 = arith.constant 0 : i32
    return %arg0, %arg1, %c0_i32 : i32, i32, i32
  }
}

</mosaic_0001>

<bundles_post_ra>
// kernel: tpu_custom_call.1
= control target key start
LH: loop header
LB: loop body
LE: loop exit
PB: predicated region body
PF: predicated region fallthrough
CT: control target
= control target key end

     0   :  { %s1517_s0 = inlined_call_operand.hbm [shape: s32[2,8,12], index: 0, kind: input, shape index: {}]   ;;  %s1518_s1 = inlined_call_operand.hbm [shape: f32[2,8,64], index: 1, kind: input, shape index: {}]   ;;  %s1519_s2 = inlined_call_operand.hbm [shape: f32[196,128], index: 2, kind: input, shape index: {}]   ;;  %s1520_s3 = inlined_call_operand.hbm [shape: f32[64,128], index: 3, kind: input, shape index: {}]   ;;  %s1521_s4 = inlined_call_operand.hbm [shape: f32[2,8,128], index: 4, kind: output, shape index: {}]  }
   0x1   :  { %1527 = sst [smem:[#allocation17_spill]] %s1519_s2 }
   0x2   :  { %1528 = sst [smem:[#allocation18_spill]] %s1520_s3 }
   0x3   :  { %9 = vsyncpa [#allocation3], 0 }
   0x4   :  { %11 = vsyncpa [#allocation3 + $0x1], 0 }
   0x5   :  { %12 = vsyncpa [#allocation6], 0 }
   0x6   :  { %14 = vsyncpa [#allocation6 + $0x1], 0 }
   0x7   :  { %15 = vsyncpa [#allocation9], 0 }
   0x8   :  { %16 = vsyncpa [#allocation4], 0 }
   0x9   :  { %18 = vsyncpa [#allocation4 + $0x1], 0  ;;  %s1192_s15 = smov 0   ;;  %s1194_s16 = smov 0  }
   0xa   :  { %s1196_s17 = smov 0   ;;  %s1198_s18 = smov 0  }
   0xb   :  { %s1200_s19 = smov 0   ;;  %s1202_s20 = smov 0  }
   0xc LB: > { %s1223_s21 = sadd.s32 4294967295, %s1143_s20   ;;  %s715_s22 = sadd.s32 4294967294, %s1143_s20   ;;  %s1143_s20 = sphi %s1202_s20, %s24_s20   ;;  %s1139_s19 = sphi %s1200_s19, %s1553_s19   ;;  %s1135_s18 = sphi %s1198_s18, %s1552_s18   ;;  %s1131_s17 = sphi %s1196_s17, %s1551_s17   ;;  %s1127_s16 = sphi %s1194_s16, %s1550_s16   ;;  %s1123_s15 = sphi %s1192_s15, %s1549_s15  }
   0xd   : > { %p58_p0 = scmp.ne.s32.totalorder %s1127_s16, %s1123_s15  ;;  %p1522_p1 = scmp.eq.s32.totalorder %s1223_s21, 0 }
   0xe   : > { %p160_p3 = scmp.eq.s32.totalorder %s715_s22, 1  ;;  %p716_p5 = scmp.ge.s32.totalorder %s1143_s20, 1 }
   0xf   : > { %p1232_p4 = por %p1522_p1, %p58_p0  ;;  %p167_p7 = scmp.lt.s32.totalorder %s1143_s20, 3 }
  0x10   : > { %p1237_p6 = por %p160_p3, %p58_p0  ;;  %s1145_s26 = smov [#allocation7]  }
  0x11   : > { %s1529_s23 = scalar_select %p1232_p4, 1, 0 }
  0x12   : > { %s1530_s24 = scalar_select %p1237_p6, 1, 0 }
  0x13   : > { %p1242_p8 = pnand %p716_p5, %p167_p7  ;;  %s179_s27 = sshll.u32 %s1145_s26, 4  ;;  %s1246_s27 = int_to_ptr.vmem [resolvable:$true] %s179_s27 }
  0x14   : > { %s1146_s29 = smov [#allocation8]   ;;  %s1533_s2 = sld [smem:[#allocation17_spill]] }
  0x15   : > { %s1531_s25 = scalar_select %p1242_p8, 1, 0 }
  0x16   : > { %p830_p9 = pneg %p1242_p8  ;;  %s192_s30 = sshll.u32 %s1146_s29, 4  ;;  %s1257_s30 = int_to_ptr.vmem [resolvable:$true] %s192_s30 }
  0x18   : > { %p1253_p11 = pnand %p830_p9, %p1522_p1 }
  0x1a   : > { %s933_s7 = scalar_lea.hbm %s1533_s2, 3200  ;;  %p935_p13 = pneg %p1253_p11 }
  0x1b   : > { %p934_p12 = scmp.ne.s32.totalorder %s1533_s2, %s933_s7  ;;  %p940_p5 = scmp.lt.u32.totalorder %s933_s7, %s1533_s2 }
  0x1d   : > { %p936_p0 = pnand %p935_p13, %p934_p12 }
  0x1f   : > { %p937_p3 = pneg %p936_p0 }
  0x21   : > { %p942_p7 = pnand %p940_p5, %p937_p3 }
  0x23   : > { %945 = shalt.err (!%p942_p7)
}
  0x24   : > { %s946_s12 = scalar_lea.vmem %s1246_s27, 3200  ;;  %p954_p2 = scmp.lt.s32.totalorder %s1246_s27, %s1246_s27 }
  0x25   : > { %p947_p9 = scmp.ne.s32.totalorder %s1246_s27, %s946_s12  ;;  %p955_p12 = scmp.lt.s32.totalorder %s946_s12, %s946_s12 }
  0x27   : > { %p949_p10 = pnand %p947_p9, %p935_p13  ;;  %p956_p0 = por %p955_p12, %p954_p2 }
  0x29   : > { %p950_p1 = pneg %p949_p10 }
  0x2b   : > { %p957_p6 = pnand %p956_p0, %p950_p1 }
  0x2d   : > { %960 = shalt.err (!%p957_p6)
}
  0x2e   : > { %s1147_s13 = smov 128   ;;  %s1148_s14 = smov 8  }
  0x2f   : > { %833 = dma.hbm_to_vmem [thread:$0]  (!%p1253_p11), %s1533_s2, 3200, %s1246_s27, [#allocation6], %s1147_s13, %s1147_s13, %s1148_s14  }
  0x30   : > { %s1534_s3 = sld [smem:[#allocation18_spill]] }
  0x36   : > { %s961_s6 = scalar_lea.hbm %s1534_s3, 1024 }
  0x37   : > { %p962_p2 = scmp.ne.s32.totalorder %s1534_s3, %s961_s6  ;;  %p968_p10 = scmp.lt.u32.totalorder %s961_s6, %s1534_s3 }
  0x39   : > { %p964_p1 = pnand %p962_p2, %p935_p13 }
  0x3b   : > { %p965_p6 = pneg %p964_p1 }
  0x3d   : > { %p970_p3 = pnand %p968_p10, %p965_p6 }
  0x3f   : > { %973 = shalt.err (!%p970_p3)
}
  0x40   : > { %s974_s27 = scalar_lea.vmem %s1257_s30, 1024  ;;  %p982_p12 = scmp.lt.s32.totalorder %s1257_s30, %s1257_s30 }
  0x41   : > { %p975_p5 = scmp.ne.s32.totalorder %s1257_s30, %s974_s27  ;;  %p983_p0 = scmp.lt.s32.totalorder %s974_s27, %s974_s27 }
  0x43   : > { %p977_p7 = pnand %p975_p5, %p935_p13  ;;  %p984_p2 = por %p983_p0, %p982_p12 }
  0x45   : > { %p978_p9 = pneg %p977_p7 }
  0x47   : > { %p985_p1 = pnand %p984_p2, %p978_p9 }
  0x49   : > { %988 = shalt.err (!%p985_p1)
}
  0x4a   : > { %836 = dma.hbm_to_vmem [thread:$0]  (!%p1253_p11), %s1534_s3, 1024, %s1257_s30, [#allocation9], %s1147_s13, %s1147_s13, %s1148_s14  }
  0x4b   : > { %s36_s22 = sadd.s32 1, %s1139_s19  ;;  %s45_s26 = sadd.s32 1, %s1131_s17 }
  0x4c   : > { %p38_p13 = scmp.ge.s32.totalorder %s36_s22, 2  ;;  %p52_p6 = scmp.ne.s32.totalorder %s1131_s17, %s1127_s16 }
  0x4d   : > { %p53_p10 = scmp.eq.s32.totalorder %s1143_s20, 0  ;;  %p850_p3 = scmp.lt.s32.totalorder %s1143_s20, 2 }
  0x4e   : > { %s1555_s22 = smov (%p38_p13, %s36_s22), 0  ;;  %p1536_p7 = scmp.eq.s32.totalorder %s1223_s21, 1 }
  0x4f   : > { %1535 = sst [smem:[#allocation16_spill]] %s1555_s22  ;;  %p54_p5 = por %p53_p10, %p52_p6 }
  0x50   : > { %p1321_p9 = por %p1536_p7, %p52_p6  ;;  %s40_s29 = ssub.s32 %s1139_s19, %s1555_s22 }
  0x51   : > { %s206_s5 = sand.u32 1, %s1131_s17   ;;  %p43_p12 = scmp.eq.s32.totalorder %s40_s29, 0 }
  0x52   : > { %s1537_s28 = scalar_select %p1321_p9, 1, 0 }
  0x53   : > { %s1328_s30 = sshll.u32 %s206_s5, 3  ;;  %s721_s13 = sshll.u32 %s1139_s19, 7 }
  0x54   : > { %s1332_s14 = scalar_select %p43_p12, %s1131_s17, %s45_s26  }
  0x55   : > { %s1337_s8 = scalar_lea.hbm %s1517_s0, %s721_s13  ;;  %s210_s9 = scalar_lea.vmem [#allocation2], %s1328_s30 }
  0x56   : > { %s218_s10 = sshll.u32 %s210_s9, 4  ;;  %p1342_p11 = pnand %p850_p3, %p54_p5  ;;  %s1346_s10 = int_to_ptr.vmem [resolvable:$true] %s218_s10 }
  0x57   : > { %s1351_s26 = scalar_lea.hbm %s1518_s1, %s721_s13  ;;  %s207_s29 = scalar_lea.sflag [#allocation3], %s206_s5 }
  0x58   : > { %s989_s6 = scalar_lea.hbm %s1337_s8, 128  ;;  %p991_p2 = pneg %p1342_p11 }
  0x59   : > { %p990_p0 = scmp.ne.s32.totalorder %s1337_s8, %s989_s6  ;;  %s994_s2 = scalar_lea.hbm %s1517_s0, 256 }
  0x5a   : > { %p995_p6 = scmp.lt.u32.totalorder %s1337_s8, %s1517_s0  ;;  %p996_p10 = scmp.lt.u32.totalorder %s994_s2, %s989_s6 }
  0x5b   : > { %p992_p1 = pnand %p991_p2, %p990_p0  ;;  %p998_p5 = scmp.lt.u32.totalorder %s989_s6, %s1337_s8 }
  0x5c   : > { %p997_p3 = por %p996_p10, %p995_p6 }
  0x5d   : > { %p993_p13 = pneg %p992_p1 }
  0x5e   : > { %p999_p7 = por %p998_p5, %p997_p3 }
  0x60   : > { %p1000_p12 = pnand %p999_p7, %p993_p13 }
  0x62   : > { %1003 = shalt.err (!%p1000_p12)
}
  0x63   : > { %s1004_s5 = scalar_lea.vmem %s1346_s10, 128  ;;  %s1149_s13 = smov [#allocation2]  }
  0x64   : > { %p1005_p0 = scmp.ne.s32.totalorder %s1346_s10, %s1004_s5  ;;  %s1009_s11 = sshll.u32 %s1149_s13, 4  ;;  %s1010_s11 = int_to_ptr.vmem [resolvable:$false] %s1009_s11 }
  0x65   : > { %s1011_s3 = scalar_lea.vmem %s1010_s11, 256  ;;  %p1012_p4 = scmp.lt.s32.totalorder %s1346_s10, %s1010_s11 }
  0x66   : > { %p1007_p1 = pnand %p1005_p0, %p991_p2  ;;  %p1013_p6 = scmp.lt.s32.totalorder %s1011_s3, %s1004_s5 }
  0x68   : > { %p1008_p9 = pneg %p1007_p1  ;;  %p1014_p10 = por %p1013_p6, %p1012_p4 }
  0x6a   : > { %p1015_p3 = pnand %p1014_p10, %p1008_p9 }
  0x6c   : > { %1018 = shalt.err (!%p1015_p3)
}
  0x6d   : > { %840 = dma.hbm_to_vmem [thread:$0]  (!%p1342_p11), %s1337_s8, 128, %s1346_s10, %s207_s29  }
  0x6e   : > { %s225_s2 = sand.u32 1, %s1143_s20   ;;  %s229_s22 = scalar_lea.vmem [#allocation5], %s1328_s30 }
  0x6f   : > { %s237_s12 = sshll.u32 %s229_s22, 4  ;;  %s226_s6 = scalar_lea.sflag [#allocation6], %s225_s2  ;;  %s238_s12 = int_to_ptr.vmem [resolvable:$true] %s237_s12 }
  0x70   : > { %s1019_s7 = scalar_lea.hbm %s1351_s26, 128  ;;  %s1024_s13 = scalar_lea.hbm %s1518_s1, 256 }
  0x71   : > { %p1020_p4 = scmp.ne.s32.totalorder %s1351_s26, %s1019_s7  ;;  %p1025_p5 = scmp.lt.u32.totalorder %s1351_s26, %s1518_s1 }
  0x72   : > { %p1026_p7 = scmp.lt.u32.totalorder %s1024_s13, %s1019_s7  ;;  %p1028_p0 = scmp.lt.u32.totalorder %s1019_s7, %s1351_s26 }
  0x73   : > { %p1022_p9 = pnand %p1020_p4, %p991_p2 }
  0x74   : > { %p1027_p12 = por %p1026_p7, %p1025_p5 }
  0x75   : > { %p1023_p13 = pneg %p1022_p9 }
  0x76   : > { %p1029_p1 = por %p1028_p0, %p1027_p12 }
  0x78   : > { %p1030_p6 = pnand %p1029_p1, %p1023_p13 }
  0x7a   : > { %1033 = shalt.err (!%p1030_p6)
}
  0x7b   : > { %s1034_s30 = scalar_lea.vmem %s238_s12, 128  ;;  %s1150_s8 = smov [#allocation5]  }
  0x7c   : > { %p1035_p10 = scmp.ne.s32.totalorder %s238_s12, %s1034_s30  ;;  %s1039_s10 = sshll.u32 %s1150_s8, 4  ;;  %s1040_s10 = int_to_ptr.vmem [resolvable:$false] %s1039_s10 }
  0x7d   : > { %s1041_s29 = scalar_lea.vmem %s1040_s10, 256  ;;  %p1042_p9 = scmp.lt.s32.totalorder %s238_s12, %s1040_s10 }
  0x7e   : > { %p1037_p3 = pnand %p1035_p10, %p991_p2  ;;  %p1043_p8 = scmp.lt.s32.totalorder %s1041_s29, %s1034_s30 }
  0x80   : > { %p1038_p4 = pneg %p1037_p3  ;;  %p1044_p5 = por %p1043_p8, %p1042_p9 }
  0x82   : > { %p1045_p7 = pnand %p1044_p5, %p1038_p4 }
  0x84   : > { %1048 = shalt.err (!%p1045_p7)
}
  0x85   : > { %843 = dma.hbm_to_vmem [thread:$0]  (!%p1342_p11), %s1351_s26, 128, %s238_s12, %s226_s6  }
  0x86   : > { %p1539_p13 = scmp.ne.s32.totalorder %s1531_s25, 0 }
  0x87   : > { %s1402_s2 = sand.u32 (!%p1539_p13), 1, %s1127_s16   ;;  %p1540_p8 = scmp.ne.s32.totalorder (!%p1539_p13), %s1529_s23, 0 }
  0x88   : > { %246 = sbr.rel (%p1539_p13) target bundleno = 550 (0x226), region = 36  ;;  %s1405_s22 = sshll.u32 (!%p1539_p13), %s1402_s2, 3 }
  0x89   : > { %s249_s7 = scalar_lea.sflag (!%p1539_p13), [#allocation3], %s1402_s2  ;;  %s252_s9 = scalar_lea.vmem (!%p1539_p13), [#allocation2], %s1405_s22 }
  0x8f   : > { %1102 = dma.done.wait (%p1540_p8), %s249_s7, 128  }
  0x90   : > { %1104 = vsyncadd (%p1540_p8), %s249_s7, 4294967168  ;;  %s257_s25 = sand.u32 1, %s1223_s21   ;;  %s261_s26 = scalar_lea.vmem [#allocation5], %s1405_s22 }
  0x91   : > { %s258_s27 = scalar_lea.sflag [#allocation6], %s257_s25 }
  0x92   : > { %1106 = dma.done.wait (%p1540_p8), %s258_s27, 128  }
  0x93   : > { %1108 = vsyncadd (%p1540_p8), %s258_s27, 4294967168  ;;  %p1541_p11 = scmp.eq.s32.totalorder %s1223_s21, 0 }
  0x95   : > { %1110 = dma.done.wait (%p1541_p11), [#allocation6], 3200   ;;  %p1542_p2 = pmov %p1541_p11 }
  0x97   : > { %1112 = vsyncadd (%p1542_p2), [#allocation6], 4294964096  ;;  %p1543_p12 = pmov %p1542_p2 }
  0x98   : > { %p1544_p0 = pmov %p1542_p2 }
  0x99   : > { %1114 = dma.done.wait (%p1543_p12), [#allocation9], 1024  }
  0x9a   : > { %1116 = vsyncadd (%p1544_p0), [#allocation9], 4294966272  ;;  %v1151_v0 = vmov 2   ;;  %v1152_v1 = vmov 0   ;;  %v1153_v2 = vmov 0.0|0.0   ;;  %v1429_v3 = vld [vmem:[%s252_s9] sm:$0xff] }
  0x9b   : > { %923 = vset.pattern.permute.xlu1 %v1151_v0  ;;  %921 = vset.pattern.permute.xlu0 %v1152_v1  ;;  %v389_v4 = vld [vmem:[#allocation7] sm:$0xff]  ;;  %v390_v5 = vld [vmem:[#allocation7 + $0x8] sm:$0xff]  ;;  %v391_v7 = vld [vmem:[#allocation7 + $0x10] sm:$0xff]  ;;  %v1154_v10 = vmov 3   ;;  %v1155_v11 = vmov 1   ;;  %v1156_v15 = vmov 4   ;;  %v299_v1 = vlaneseq }
  0x9c   : > { %779 = vmatprep.subr.bf16.mxu0 %v1153_v2  ;;  %767 = vmatprep.subr.bf16.mxu1 %v1153_v2  ;;  %v780_v6 = vpack.c.bf16 %v390_v5, %v389_v4  ;;  %v392_v8 = vld [vmem:[#allocation7 + $0x18] sm:$0xff]  ;;  %v393_v12 = vld [vmem:[#allocation7 + $0x20] sm:$0xff]  ;;  %v394_v13 = vld [vmem:[#allocation7 + $0x28] sm:$0xff]  ;;  %v1157_v16 = vmov 5   ;;  %v1158_v20 = vmov 6   ;;  %v1159_v21 = vmov 8  }
  0x9d   : > { %316 = vperm.xlu1 %923, %v1429_v3   ;;  %304 = vperm.xlu0 %921, %v1429_v3   ;;  %v783_v9 = vpack.c.bf16 %v392_v8, %v391_v7  ;;  %v786_v14 = vpack.c.bf16 %v394_v13, %v393_v12  ;;  %v395_v17 = vld [vmem:[#allocation7 + $0x30] sm:$0xff]  ;;  %v396_v18 = vld [vmem:[#allocation7 + $0x38] sm:$0xff]  ;;  %v397_v22 = vld [vmem:[#allocation7 + $0x40] sm:$0xff]  ;;  %v1160_v29 = vmov 7   ;;  %v1161_v30 = vmov 11   ;;  %s736_s21 = sshll.u32 %s1135_s18, 7 }
  0x9e   : > { %781 = vmatpush1.bf16.msra.mxu0 %v780_v6  ;;  %v789_v19 = vpack.c.bf16 %v396_v18, %v395_v17  ;;  %v398_v23 = vld [vmem:[#allocation7 + $0x48] sm:$0xff]  ;;  %v399_v26 = vld [vmem:[#allocation7 + $0x50] sm:$0xff]  ;;  %v400_v27 = vld [vmem:[#allocation7 + $0x58] sm:$0xff]  ;;  %v1162_v37 = vmov 9   ;;  %v1163_v45 = vmov 10   ;;  %vm1164_vm0 = vmmov 0   ;;  %s1468_s13 = scalar_lea.hbm %s1521_s4, %s736_s21 }
  0x9f   : > { %782 = vmatprep.subr.bf16.mxu0 %v1153_v2  ;;  %v792_v24 = vpack.c.bf16 %v398_v23, %v397_v22  ;;  %v415_v25 = vld [vmem:[#allocation8] sm:$0xff]  ;;  %v416_v28 = vld [vmem:[#allocation8 + $0x8] sm:$0xff]  ;;  %v795_v32 = vpack.c.bf16 %v400_v27, %v399_v26  ;;  %v401_v33 = vld [vmem:[#allocation7 + $0x60] sm:$0xff]  ;;  %v1165_v55 = vmov 0.0   ;;  %vm423_vm1 = vcmask 523264   ;;  %s298_s23 = scalar_lea.vmem [#allocation10], %s1405_s22 }
  0xa0   : > { %v768_v31 = vpack.c.bf16 %v416_v28, %v415_v25  ;;  %v402_v34 = vld [vmem:[#allocation7 + $0x68] sm:$0xff]  ;;  %v417_v35 = vld [vmem:[#allocation8 + $0x10] sm:$0xff]  ;;  %v418_v36 = vld [vmem:[#allocation8 + $0x18] sm:$0xff]  ;;  %764 = vmatprep.mubr.msk.f32.mxu1 %vm1164_vm0, %v1165_v55  ;;  %vm501_vm2 = vcmask 1043456   ;;  %v300_v5 = vand.u32 127, %v299_v1  ;;  %s591_s12 = sshll.u32 %s298_s23, 4  ;;  %s1470_s12 = int_to_ptr.vmem [resolvable:$true] %s591_s12 }
  0xa1   : > { %924 = vset.pattern.permute.xlu1 %v1154_v10  ;;  %922 = vset.pattern.permute.xlu0 %v1155_v11  ;;  %v771_v38 = vpack.c.bf16 %v418_v36, %v417_v35  ;;  %v798_v39 = vpack.c.bf16 %v402_v34, %v401_v33  ;;  %v419_v40 = vld [vmem:[#allocation8 + $0x20] sm:$0xff]  ;;  %v403_v41 = vld [vmem:[#allocation7 + $0x70] sm:$0xff]  ;;  %v404_v42 = vld [vmem:[#allocation7 + $0x78] sm:$0xff]  ;;  %s577_s11 = scalar_lea.sflag [#allocation4], %s1402_s2  ;;  %s1049_s3 = scalar_lea.vmem %s1470_s12, 128 }
  0xa2   : > { %323 = vperm.xlu1 %924, %v1429_v3   ;;  %309 = vperm.xlu0 %922, %v1429_v3   ;;  %v420_v43 = vld [vmem:[#allocation8 + $0x28] sm:$0xff]  ;;  %v801_v46 = vpack.c.bf16 %v404_v42, %v403_v41  ;;  %v405_v47 = vld [vmem:[#allocation7 + $0x80] sm:$0xff]  ;;  %v406_v48 = vld [vmem:[#allocation7 + $0x88] sm:$0xff]  ;;  %v301_v8 = vadd.s32 128, %v300_v5  ;;  %p1050_p1 = scmp.ne.s32.totalorder %s1470_s12, %s1049_s3  ;;  %p1545_p6 = scmp.ne.s32.totalorder %s1537_s28, 0 }
  0xa3   : > { %784 = vmatpush1.bf16.msra.mxu0 %v783_v9  ;;  %769 = vmatpush3.bf16.msra.mxu1 %v768_v31  ;;  %v774_v44 = vpack.c.bf16 %v420_v43, %v419_v40  ;;  %v421_v49 = vld [vmem:[#allocation8 + $0x30] sm:$0xff]  ;;  %v422_v50 = vld [vmem:[#allocation8 + $0x38] sm:$0xff]  ;;  %v804_v52 = vpack.c.bf16 %v406_v48, %v405_v47  ;;  %v407_v53 = vld [vmem:[#allocation7 + $0x90] sm:$0xff]  ;;  %s1166_s18 = smov [#allocation10]  }
  0xa4   : > { %785 = vmatprep.subr.bf16.mxu0 %v1153_v2  ;;  %770 = vmatprep.subr.bf16.mxu1 %v1153_v2  ;;  %v777_v51 = vpack.c.bf16 %v422_v50, %v421_v49  ;;  %v408_v54 = vld [vmem:[#allocation7 + $0x98] sm:$0xff]  ;;  %v409_v58 = vld [vmem:[#allocation7 + $0xa0] sm:$0xff]  ;;  %v410_v59 = vld [vmem:[#allocation7 + $0xa8] sm:$0xff]  ;;  %p1051_p10 = pnand %p1050_p1, %p1545_p6  ;;  %s1053_s30 = sshll.u32 %s1166_s18, 4  ;;  %s1054_s30 = int_to_ptr.vmem [resolvable:$false] %s1053_s30 }
  0xa5   : > { %v414_v56 = vld [vmem:[%s261_s26] sm:$0xff]  ;;  %v807_v57 = vpack.c.bf16 %v408_v54, %v407_v53  ;;  %v810_v60 = vpack.c.bf16 %v410_v59, %v409_v58  ;;  %v413_v0 = vld [vmem:[#allocation7 + $0xc0] sm:$0xf]  ;;  %s1055_s8 = scalar_lea.vmem %s1054_s30, 256  ;;  %p1056_p4 = scmp.lt.s32.totalorder %s1470_s12, %s1054_s30 }
  0xa6   : > { %925 = vset.pattern.permute.xlu1 %v1156_v15  ;;  %926 = vset.pattern.permute.xlu0 %v1157_v16  ;;  %v411_v61 = vld [vmem:[#allocation7 + $0xb0] sm:$0xff]  ;;  %v412_v62 = vld [vmem:[#allocation7 + $0xb8] sm:$0xff]  ;;  %p1052_p3 = pneg %p1051_p10  ;;  %p1057_p9 = scmp.lt.s32.totalorder %s1055_s8, %s1049_s3 }
  0xa7   : > { %330 = vperm.xlu1 %925, %v1429_v3   ;;  %337 = vperm.xlu0 %926, %v1429_v3   ;;  %v813_v63 = vpack.c.bf16 %v412_v62, %v411_v61 }
  0xa8   : > { %787 = vmatpush1.bf16.msra.mxu0 %v786_v14  ;;  %772 = vmatpush3.bf16.msra.mxu1 %v771_v38  ;;  %p1058_p5 = por %p1057_p9, %p1056_p4 }
  0xa9   : > { %788 = vmatprep.subr.bf16.mxu0 %v1153_v2  ;;  %773 = vmatprep.subr.bf16.mxu1 %v1153_v2 }
  0xaa   : > { %p1059_p7 = pnand %p1058_p5, %p1052_p3 }
  0xab   : > { %927 = vset.pattern.permute.xlu1 %v1158_v20  ;;  %929 = vset.pattern.permute.xlu0 %v1159_v21 }
  0xac   : > { %344 = vperm.xlu1 %927, %v1429_v3   ;;  %358 = vperm.xlu0 %929, %v1429_v3  }
  0xad   : > { %790 = vmatpush1.bf16.msra.mxu0 %v789_v19  ;;  %775 = vmatpush3.bf16.msra.mxu1 %v774_v44 }
  0xae   : > { %791 = vmatprep.subr.bf16.mxu0 %v1153_v2  ;;  %776 = vmatprep.subr.bf16.mxu1 %v1153_v2 }
  0xb0   : > { %928 = vset.pattern.permute.xlu1 %v1160_v29  ;;  %932 = vset.pattern.permute.xlu0 %v1161_v30 }
  0xb1   : > { %351 = vperm.xlu1 %928, %v1429_v3   ;;  %379 = vperm.xlu0 %932, %v1429_v3  }
  0xb2   : > { %793 = vmatpush1.bf16.msra.mxu0 %v792_v24  ;;  %778 = vmatpush3.bf16.msra.mxu1 %v777_v51 }
  0xb3   : > { %794 = vmatprep.subr.bf16.mxu0 %v1153_v2 }
  0xb5   : > { %930 = vset.pattern.permute.xlu1 %v1162_v37  ;;  %765 = vmatmul.mubr.msk.f32.vlgmr.msra.gmra.mrb[0].mxu1 %vm423_vm1, %v414_v56 }
  0xb6   : > { %365 = vperm.xlu1 %930, %v1429_v3   ;;  %796 = vmatpush1.bf16.msra.mxu0 %v795_v32 }
  0xb7   : > { %797 = vmatprep.subr.bf16.mxu0 %v1153_v2 }
  0xba   : > { %931 = vset.pattern.permute.xlu1 %v1163_v45  ;;  %799 = vmatpush1.bf16.msra.mxu0 %v798_v39 }
  0xbb   : > { %372 = vperm.xlu1 %931, %v1429_v3   ;;  %800 = vmatprep.subr.bf16.mxu0 %v1153_v2 }
  0xbe   : > { %802 = vmatpush1.bf16.msra.mxu0 %v801_v46 }
  0xbf   : > { %803 = vmatprep.subr.bf16.mxu0 %v1153_v2 }
  0xc2   : > { %805 = vmatpush1.bf16.msra.mxu0 %v804_v52 }
  0xc3   : > { %806 = vmatprep.subr.bf16.mxu0 %v1153_v2 }
  0xc6   : > { %808 = vmatpush1.bf16.msra.mxu0 %v807_v57 }
  0xc7   : > { %809 = vmatprep.subr.bf16.mxu0 %v1153_v2 }
  0xca   : > { %811 = vmatpush1.bf16.msra.mxu0 %v810_v60 }
  0xcb   : > { %812 = vmatprep.subr.bf16.mxu0 %v1153_v2 }
  0xce   : > { %814 = vmatpush1.bf16.msra.mxu0 %v813_v63 }
  0xcf   : > { %553 = vmatprep.subr.mxu0 %v1165_v55 }
  0xd2   : > { %733 = vmatpush1.msk.msra.mxu0 %vm501_vm2, %v413_v0 }
 0x11c   : > { %v317_v3 = vpop.permute.xlu1 %316  ;;  %v305_v4 = vpop.permute.xlu0 %304 }
 0x11d   : > { %vm306_vm3 = vcmp.eq.s32.totalorder %v300_v5, %v305_v4  ;;  %vm307_vm5 = vcmp.eq.s32.totalorder %v301_v8, %v305_v4  ;;  %vm318_vm9 = vcmp.eq.s32.totalorder %v300_v5, %v317_v3  ;;  %vm319_vm10 = vcmp.eq.s32.totalorder %v301_v8, %v317_v3 }
 0x121   : > { %v324_v6 = vpop.permute.xlu1 %323  ;;  %v310_v7 = vpop.permute.xlu0 %309 }
 0x122   : > { %vm311_vm4 = vcmp.eq.s32.totalorder %v300_v5, %v310_v7  ;;  %vm312_vm6 = vcmp.eq.s32.totalorder %v301_v8, %v310_v7  ;;  %vm325_vm13 = vcmp.eq.s32.totalorder %v300_v5, %v324_v6  ;;  %vm326_vm15 = vcmp.eq.s32.totalorder %v301_v8, %v324_v6 }
 0x123   : > { %vm313_vm7 = vmor %vm306_vm3, %vm311_vm4 }
 0x124   : > { %vm314_vm8 = vmor %vm307_vm5, %vm312_vm6 }
 0x125   : > { %vm320_vm11 = vmor %vm313_vm7, %vm318_vm9 }
 0x126   : > { %v331_v9 = vpop.permute.xlu1 %330  ;;  %vm321_vm12 = vmor %vm314_vm8, %vm319_vm10  ;;  %v338_v2 = vpop.permute.xlu0 %337 }
 0x127   : > { %vm332_vm14 = vcmp.eq.s32.totalorder %v300_v5, %v331_v9  ;;  %vm327_vm0 = vmor %vm320_vm11, %vm325_vm13  ;;  %vm333_vm1 = vcmp.eq.s32.totalorder %v301_v8, %v331_v9  ;;  %vm339_vm4 = vcmp.eq.s32.totalorder %v300_v5, %v338_v2  ;;  %vm340_vm6 = vcmp.eq.s32.totalorder %v301_v8, %v338_v2 }
 0x128   : > { %vm328_vm2 = vmor %vm321_vm12, %vm326_vm15 }
 0x129   : > { %vm334_vm3 = vmor %vm327_vm0, %vm332_vm14 }
 0x12a   : > { %vm335_vm5 = vmor %vm328_vm2, %vm333_vm1 }
 0x12b   : > { %v345_v10 = vpop.permute.xlu1 %344  ;;  %vm341_vm9 = vmor %vm334_vm3, %vm339_vm4  ;;  %v359_v12 = vpop.permute.xlu0 %358 }
 0x12c   : > { %vm346_vm7 = vcmp.eq.s32.totalorder %v300_v5, %v345_v10  ;;  %vm347_vm8 = vcmp.eq.s32.totalorder %v301_v8, %v345_v10  ;;  %vm342_vm10 = vmor %vm335_vm5, %vm340_vm6  ;;  %vm360_vm14 = vcmp.eq.s32.totalorder %v300_v5, %v359_v12  ;;  %vm361_vm2 = vcmp.eq.s32.totalorder %v301_v8, %v359_v12 }
 0x12d   : > { %vm348_vm13 = vmor %vm341_vm9, %vm346_vm7 }
 0x12e   : > { %vm349_vm15 = vmor %vm342_vm10, %vm347_vm8 }
 0x130   : > { %v352_v11 = vpop.permute.xlu1 %351  ;;  %v380_v14 = vpop.permute.xlu0 %379 }
 0x131   : > { %vm353_vm11 = vcmp.eq.s32.totalorder %v300_v5, %v352_v11  ;;  %vm354_vm12 = vcmp.eq.s32.totalorder %v301_v8, %v352_v11 }
 0x132   : > { %vm355_vm0 = vmor %vm348_vm13, %vm353_vm11  ;;  %vm381_vm11 = vcmp.eq.s32.totalorder %v300_v5, %v380_v14 }
 0x133   : > { %vm356_vm1 = vmor %vm349_vm15, %vm354_vm12  ;;  %vm382_vm12 = vcmp.eq.s32.totalorder %v301_v8, %v380_v14 }
 0x134   : > { %vm362_vm4 = vmor %vm355_vm0, %vm360_vm14  ;;  %vm497_vm14 = vcmask 556032  }
 0x135   : > { %v366_v13 = vpop.permute.xlu1 %365  ;;  %vm363_vm6 = vmor %vm356_vm1, %vm361_vm2 }
 0x136   : > { %vm367_vm3 = vcmp.eq.s32.totalorder %v300_v5, %v366_v13  ;;  %vm368_vm5 = vcmp.eq.s32.totalorder %v301_v8, %v366_v13 }
 0x137   : > { %vm369_vm7 = vmor %vm362_vm4, %vm367_vm3 }
 0x138   : > { %vm370_vm9 = vmor %vm363_vm6, %vm368_vm5 }
 0x13a   : > { %v373_v15 = vpop.permute.xlu1 %372 }
 0x13b   : > { %vm374_vm8 = vcmp.eq.s32.totalorder %v300_v5, %v373_v15  ;;  %vm375_vm10 = vcmp.eq.s32.totalorder %v301_v8, %v373_v15 }
 0x13c   : > { %vm376_vm13 = vmor %vm369_vm7, %vm374_vm8 }
 0x13d   : > { %vm377_vm15 = vmor %vm370_vm9, %vm375_vm10 }
 0x13e   : > { %vm383_vm0 = vmor %vm376_vm13, %vm381_vm11 }
 0x13f   : > { %vm384_vm1 = vmor %vm377_vm15, %vm382_vm12  ;;  %v730_v16 = vsel %vm383_vm0, 1.0, %v1165_v55 }
 0x140   : > { %v731_v17 = vsel %vm384_vm1, 1.0, %v1165_v55 }
 0x141   : > { %734 = vmatprep.mubr.msk.f32.mxu0 %vm497_vm14, %v731_v17 }
 0x142   : > { %570 = vmatmul.mubr.f32.vlgmr.msra.gmra.mrb[0].mxu0 %v730_v16 }
 0x188   : > { %v493_v18 = vpop.f32.mrb[0].mxu1 }
 0x189   : > { %v766_v19 = vpop.f32.mrb[1].mxu1 }
 0x215   : > { %v571_v20 = vpop.f32.mrb[0].mxu0 }
 0x216   : > { %v572_v21 = vadd.f32 %v571_v20, %v493_v18  ;;  %v573_v22 = vpop.f32.mrb[1].mxu0 }
 0x218   : > { %575 = vst [vmem:[%s298_s23] sm:$0xff] %v572_v21 }
 0x219   : > { %1062 = shalt.err (!%p1059_p7)
}
 0x21a   : > { %s1063_s10 = scalar_lea.hbm %s1468_s13, 128  ;;  %s1067_s22 = scalar_lea.hbm %s1521_s4, 256 }
 0x21b   : > { %p1064_p13 = scmp.ne.s32.totalorder %s1468_s13, %s1063_s10  ;;  %p1068_p2 = scmp.lt.u32.totalorder %s1468_s13, %s1521_s4 }
 0x21c   : > { %p1069_p12 = scmp.lt.u32.totalorder %s1067_s22, %s1063_s10  ;;  %p1071_p1 = scmp.lt.u32.totalorder %s1063_s10, %s1468_s13 }
 0x21d   : > { %p1065_p8 = pnand %p1064_p13, %p1545_p6 }
 0x21e   : > { %p1070_p0 = por %p1069_p12, %p1068_p2 }
 0x21f   : > { %p1066_p11 = pneg %p1065_p8 }
 0x220   : > { %p1072_p10 = por %p1071_p1, %p1070_p0 }
 0x222   : > { %p1073_p3 = pnand %p1072_p10, %p1066_p11 }
 0x224   : > { %1076 = shalt.err (!%p1073_p3)
}
 0x225   : > { %828 = dma.vmem_to_hbm [thread:$0]  (%p1545_p6), %s1470_s12, 128, %s1468_s13, %s577_s11  }
 0x226 PF: > { %s603_s25 = sand.u32 1, %s1123_s15   ;;  %p1546_p4 = scmp.ne.s32.totalorder %s1530_s24, 0 }
 0x227   : > { %p1547_p9 = scmp.ge.s32.totalorder %s1143_s20, 2  ;;  %s604_s27 = scalar_lea.sflag [#allocation4], %s603_s25 }
 0x229   : > { %p845_p5 = pnand %p1547_p9, %p1546_p4 }
 0x22b   : > { %1118 = dma.done.wait (!%p845_p5), %s604_s27, 128  }
 0x22c   : > { %1120 = vsyncadd (!%p845_p5), %s604_s27, 4294967168  ;;  %s24_s20 = sadd.s32 1, %s1143_s20   ;;  %s1548_s28 = sld [smem:[#allocation16_spill]] }
 0x22d   : > { %p21_p7 = scmp.ge.s32.totalorder %s24_s20, 4   ;;  %s1549_s15 = smov %s1127_s16 }
 0x22e   : > { %s1550_s16 = smov %s1131_s17  ;;  %s1551_s17 = smov %s1332_s14 }
 0x22f   : > { %s1552_s18 = smov %s1139_s19  ;;  %23 = sbr.rel (!%p21_p7) target bundleno = 12 (0xc), region = 102 }
 0x232   : > { %s1553_s19 = smov %s1548_s28 }
 0x236   :  { %609 = vsyncpa [#allocation3], 1 }
 0x237   :  { %611 = vsyncpa [#allocation3 + $0x1], 1 }
 0x238   :  { %612 = vsyncpa [#allocation6], 1 }
 0x239   :  { %614 = vsyncpa [#allocation6 + $0x1], 1 }
 0x23a   :  { %615 = vsyncpa [#allocation9], 1 }
 0x23b   :  { %616 = vsyncpa [#allocation4], 1 }
 0x23c   :  { %618 = vsyncpa [#allocation4 + $0x1], 1 }

</bundles_post_ra>
